<compile_context>
chip_gen: v7x
topology: tpu7x:2x2x1
jax: 0.10.0
libtpu: 0.0.40
codegen_flags: <defaults>
</compile_context>

<pallas_src>
import functools

import numpy as np
import jax
import jax.numpy as jnp
from jax.experimental import pallas as pl
from jax.experimental.pallas import tpu as pltpu


# ----------------------------------------------------------------------------
# Pallas kernels
# ----------------------------------------------------------------------------
def gru_bidir_kernel(x_ref, h0_ref, wih_ref, whh_ref, bih_ref, bhhn_ref,
                     out_ref, hT_ref, gx_ref):
    """Bidirectional GRU layer over a full sequence (both directions fused).

    x_ref:    (T, B, Din)   time-major input sequence
    h0_ref:   (2, B, H)     initial hidden state [fwd, bwd]
    wih_ref:  (Din, 6H)     input->gate weights, [dir0 r,z,n | dir1 r,z,n]
    whh_ref:  (2, H, 3H)    hidden->gate weights per direction, gates [r,z,n]
    bih_ref:  (1, 6H)       b_ih with b_hh folded in for r,z gates (not n)
    bhhn_ref: (2, 1, H)     b_hn per direction (kept separate: multiplied by r)
    out_ref:  (T, B, 2H)    per-step hidden states, fwd in [:H], bwd in [H:]
    hT_ref:   (2, B, H)     final hidden state per direction
    gx_ref:   (T, B, 6H)    VMEM scratch for the hoisted input projection
    """
    T, B, Din = x_ref.shape
    H = whh_ref.shape[1]
    G3 = 3 * H

    # ---- Phase 1: one big lane-dense input projection for both directions ----
    x2d = x_ref[...].reshape(T * B, Din)
    gx = jnp.dot(x2d, wih_ref[...], preferred_element_type=jnp.float32)
    gx = gx + bih_ref[...]
    gx_ref[...] = gx.reshape(T, B, 6 * H)

    whh_f = whh_ref[0]        # (H, 3H)
    whh_b = whh_ref[1]
    bn_f = bhhn_ref[0]        # (1, H)
    bn_b = bhhn_ref[1]

    def gate(gx_t, gh, bn, h_prev):
        # gx_t, gh: (B, 3H) gate pre-activations in order [r, z, n]
        r = jax.nn.sigmoid(gx_t[:, :H] + gh[:, :H])
        z = jax.nn.sigmoid(gx_t[:, H:2 * H] + gh[:, H:2 * H])
        n = jnp.tanh(gx_t[:, 2 * H:] + r * (gh[:, 2 * H:] + bn))
        return (1.0 - z) * n + z * h_prev

    # ---- Phase 2: the serial recurrence (only h @ Whh left per step) ----
    def step(t, carry):
        h_f, h_b = carry
        tr = T - 1 - t
        gx_f = gx_ref[t]          # (B, 6H)
        gx_b = gx_ref[tr]
        gh_f = jnp.dot(h_f, whh_f, preferred_element_type=jnp.float32)  # (B, 3H)
        gh_b = jnp.dot(h_b, whh_b, preferred_element_type=jnp.float32)
        h_f = gate(gx_f[:, :G3], gh_f, bn_f, h_f)
        h_b = gate(gx_b[:, G3:], gh_b, bn_b, h_b)
        out_ref[t, :, :H] = h_f
        out_ref[tr, :, H:] = h_b
        return (h_f, h_b)

    h_f_final, h_b_final = jax.lax.fori_loop(
        0, T, step, (h0_ref[0], h0_ref[1]))
    hT_ref[0] = h_f_final
    hT_ref[1] = h_b_final


def fc_kernel(x_ref, wt_ref, b_ref, o_ref):
    """One output-dim tile of  o = x @ W^T + b  (W passed pre-transposed)."""
    o_ref[...] = (
        jnp.dot(x_ref[...], wt_ref[...], preferred_element_type=jnp.float32)
        + b_ref[...]
    )


# ----------------------------------------------------------------------------
# Wrappers around pallas_call
# ----------------------------------------------------------------------------
_VMEM = pl.BlockSpec(memory_space=pltpu.MemorySpace.VMEM)


def gru_bidir_layer(x_tm, h0_pair, wih, whh, bih, bhh_n):
    T, B, _ = x_tm.shape
    H = whh.shape[1]
    out, hT = pl.pallas_call(
        gru_bidir_kernel,
        out_shape=(
            jax.ShapeDtypeStruct((T, B, 2 * H), jnp.float32),
            jax.ShapeDtypeStruct((2, B, H), jnp.float32),
        ),
        in_specs=[_VMEM] * 6,
        out_specs=(_VMEM, _VMEM),
        scratch_shapes=[pltpu.VMEM((T, B, 6 * H), jnp.float32)],
    )(x_tm, h0_pair, wih, whh, bih, bhh_n)
    return out, hT


def fc_apply(x2d, w_t, b2d, *, tn=128):
    """Tiled (streamed) linear layer: grid over the output/vocab dimension."""
    N, F = x2d.shape
    O = w_t.shape[1]
    assert O % tn == 0, (O, tn)
    grid = (pl.cdiv(O, tn),)
    return pl.pallas_call(
        fc_kernel,
        out_shape=jax.ShapeDtypeStruct((N, O), jnp.float32),
        grid=grid,
        in_specs=[
            pl.BlockSpec((N, F), lambda j: (0, 0)),    # activations, resident
            pl.BlockSpec((F, tn), lambda j: (0, j)),   # weight tile, streamed
            pl.BlockSpec((1, tn), lambda j: (0, j)),   # bias tile
        ],
        out_specs=pl.BlockSpec((N, tn), lambda j: (0, j)),
        compiler_params=pltpu.CompilerParams(dimension_semantics=("parallel",)),
    )(x2d, w_t, b2d)


# ----------------------------------------------------------------------------
# Decoder forward (matches PyTorch Decoder.forward semantics, eval mode)
# ----------------------------------------------------------------------------
def decoder_forward(params, idxs, state):
    """idxs: (B, T) int32; state: (num_layers*2, B, H) float32."""
    # Embedding lookup (glue gather, left to XLA).
    embed = jnp.take(params["embedding"], idxs, axis=0)       # (B, T, E)

    # Single transpose to time-major at the start; stay time-major throughout.
    x = jnp.transpose(embed, (1, 0, 2))                       # (T, B, E)

    new_states = []
    for l, lp in enumerate(params["gru"]):
        h0_pair = state[2 * l:2 * l + 2]                      # (2, B, H)
        x, hT = gru_bidir_layer(x, h0_pair, lp["wih"], lp["whh"],
                                lp["bih"], lp["bhh_n"])       # x: (T, B, 2H)
        new_states.append(hT)

    T, B, F = x.shape
    pred2d = fc_apply(x.reshape(T * B, F), params["fc_wt"], params["fc_b"])
    pred = jnp.transpose(pred2d.reshape(T, B, -1), (1, 0, 2))  # (B, T, O)
    new_state = jnp.concatenate(new_states, axis=0)            # (2*L, B, H)
    return pred, new_state


# ----------------------------------------------------------------------------
# Pure-JAX reference (PyTorch GRU semantics, for correctness checking only)
# ----------------------------------------------------------------------------
def decoder_forward_ref(raw, idxs, state):
    H = raw["gru"][0][0]["w_hh"].shape[1]
    x = jnp.take(raw["embedding"], idxs, axis=0)               # (B, T, E)
    new_states = []
    for l, dirs in enumerate(raw["gru"]):
        outs = []
        for d, p in enumerate(dirs):
            x_tm = jnp.transpose(x, (1, 0, 2))
            if d == 1:
                x_tm = x_tm[::-1]

            def step(h, x_t, p=p):
                gi = x_t @ p["w_ih"].T + p["b_ih"]
                gh = h @ p["w_hh"].T + p["b_hh"]
                r = jax.nn.sigmoid(gi[:, :H] + gh[:, :H])
                z = jax.nn.sigmoid(gi[:, H:2 * H] + gh[:, H:2 * H])
                n = jnp.tanh(gi[:, 2 * H:] + r * gh[:, 2 * H:])
                h_new = (1.0 - z) * n + z * h
                return h_new, h_new

            hT, out_tm = jax.lax.scan(step, state[2 * l + d], x_tm)
            if d == 1:
                out_tm = out_tm[::-1]
            outs.append(jnp.transpose(out_tm, (1, 0, 2)))
            new_states.append(hT)
        x = jnp.concatenate(outs, axis=-1)
    B, T, F = x.shape
    pred = (x.reshape(B * T, F) @ raw["fc_w"].T + raw["fc_b"]).reshape(B, T, -1)
    return pred, jnp.stack(new_states, axis=0)


# ----------------------------------------------------------------------------
# Deterministic parameter construction (PyTorch layout) + packing for kernels
# ----------------------------------------------------------------------------
def init_raw_params(key, vocab, embed_dim, hidden, num_layers, out_dim):
    keys = iter(jax.random.split(key, 64))

    def uni(shape, bound):
        return jax.random.uniform(next(keys), shape, jnp.float32, -bound, bound)

    raw = {"embedding": jax.random.normal(next(keys), (vocab, embed_dim),
                                          jnp.float32)}
    bound = 1.0 / float(np.sqrt(hidden))
    gru = []
    for layer in range(num_layers):
        din = embed_dim if layer == 0 else 2 * hidden
        dirs = []
        for _ in range(2):
            # PyTorch layout: weight_ih (3H, Din), weight_hh (3H, H), gates [r,z,n].
            dirs.append({
                "w_ih": uni((3 * hidden, din), bound),
                "w_hh": uni((3 * hidden, hidden), bound),
                "b_ih": uni((3 * hidden,), bound),
                "b_hh": uni((3 * hidden,), bound),
            })
        gru.append(dirs)
    raw["gru"] = gru

    fc_bound = 1.0 / float(np.sqrt(2 * hidden))
    raw["fc_w"] = uni((out_dim, 2 * hidden), fc_bound)   # PyTorch Linear (O, 2H)
    raw["fc_b"] = uni((out_dim,), fc_bound)
    return raw


def pack_params(raw, hidden):
    """Repack PyTorch-layout params into the fused kernel layout."""
    H = hidden
    packed = {"embedding": raw["embedding"]}
    layers = []
    for dirs in raw["gru"]:
        wih_cols, bih_cols, whh_l, bhhn_l = [], [], [], []
        for p in dirs:
            wih_cols.append(p["w_ih"].T)                     # (Din, 3H)
            whh_l.append(p["w_hh"].T)                        # (H, 3H)
            b_ih, b_hh = p["b_ih"], p["b_hh"]
            # fold b_hr / b_hz into b_ir / b_iz; keep b_hn separate.
            bih_cols.append(jnp.concatenate(
                [b_ih[:2 * H] + b_hh[:2 * H], b_ih[2 * H:]]))
            bhhn_l.append(b_hh[2 * H:].reshape(1, H))
        layers.append({
            "wih": jnp.concatenate(wih_cols, axis=1),         # (Din, 6H)
            "whh": jnp.stack(whh_l, axis=0),                  # (2, H, 3H)
            "bih": jnp.concatenate(bih_cols).reshape(1, 6 * H),
            "bhh_n": jnp.stack(bhhn_l, axis=0),               # (2, 1, H)
        })
    packed["gru"] = layers
    packed["fc_wt"] = raw["fc_w"].T                           # (2H, O)
    packed["fc_b"] = raw["fc_b"].reshape(1, -1)               # (1, O)
    return packed


# ----------------------------------------------------------------------------
if __name__ == "__main__":
    B, T = 2, 8
    V, E, H, L, O = 50, 32, 16, 2, 256   # scaled-down stand-ins for 113377/300/150

    key = jax.random.PRNGKey(0)
    k_par, k_idx, k_st = jax.random.split(key, 3)

    raw = init_raw_params(k_par, V, E, H, L, O)
    params = pack_params(raw, H)

    idxs = jax.random.randint(k_idx, (B, T), 0, V, dtype=jnp.int32)
    state = jax.random.normal(k_st, (2 * L, B, H), jnp.float32)

    fwd = jax.jit(functools.partial(decoder_forward, params))
    pred, new_state = fwd(idxs, state)
    jax.block_until_ready((pred, new_state))

    # Shape / semantics check against a pure-JAX PyTorch-semantics reference.
    pred_ref, state_ref = decoder_forward_ref(raw, idxs, state)
    assert pred.shape == (B, T, O), pred.shape
    assert new_state.shape == (2 * L, B, H), new_state.shape
    assert jnp.allclose(pred, pred_ref, atol=1e-4, rtol=1e-4)
    assert jnp.allclose(new_state, state_ref, atol=1e-4, rtol=1e-4)

    print("KERNEL_OK")
</pallas_src>

<mosaic_0001>
module attributes {stable_mosaic.version = 11 : i64} {
  func.func @fc_kernel(%arg0: i32, %arg1: memref<16x32xf32, #tpu.memory_space<vmem>>, %arg2: memref<32x128xf32, #tpu.memory_space<vmem>>, %arg3: memref<1x128xf32, #tpu.memory_space<vmem>>, %arg4: memref<16x128xf32, #tpu.memory_space<vmem>>) attributes {dimension_semantics = [#tpu.dimension_semantics<parallel>], iteration_bounds = array<i64: 2>, scalar_prefetch = 0 : i64, scratch_operands = 0 : i64, tpu.core_type = #tpu.core_type<tc>, window_params = [{pipeline_mode = #tpu.pipeline_mode<synchronous>, transform_indices = @transform_0, window_bounds = array<i64: 16, 32>}, {transform_indices = @transform_1, window_bounds = array<i64: 32, 128>}, {transform_indices = @transform_2, window_bounds = array<i64: 1, 128>}, {transform_indices = @transform_3, window_bounds = array<i64: 16, 128>}]} {
    %c0 = arith.constant 0 : index
    %c0_0 = arith.constant 0 : index
    %0 = vector.load %arg1[%c0, %c0_0] : memref<16x32xf32, #tpu.memory_space<vmem>>, vector<16x32xf32>
    %c0_1 = arith.constant 0 : index
    %c0_2 = arith.constant 0 : index
    %1 = vector.load %arg2[%c0_1, %c0_2] : memref<32x128xf32, #tpu.memory_space<vmem>>, vector<32x128xf32>
    %cst = arith.constant dense<0.000000e+00> : vector<16x128xf32>
    %2 = tpu.matmul %0, %1, %cst {dimension_numbers = #tpu.dot_dimension_numbers<[1], [0], [0], [1], [0, 0, 1, 1], [], []>} : vector<16x32xf32>, vector<32x128xf32>, vector<16x128xf32> -> vector<16x128xf32>
    %c0_3 = arith.constant 0 : index
    %c0_4 = arith.constant 0 : index
    %3 = vector.load %arg3[%c0_3, %c0_4] : memref<1x128xf32, #tpu.memory_space<vmem>>, vector<1x128xf32>
    %4 = vector.broadcast %3 : vector<1x128xf32> to vector<16x128xf32>
    %5 = arith.addf %2, %4 : vector<16x128xf32>
    %c0_5 = arith.constant 0 : index
    %c0_6 = arith.constant 0 : index
    %6 = vector.load %arg4[%c0_5, %c0_6] : memref<16x128xf32, #tpu.memory_space<vmem>>, vector<16x128xf32>
    tpu.vector_store %arg4[%c0_5, %c0_6], %5 {strides = array<i32>} : memref<16x128xf32, #tpu.memory_space<vmem>>, vector<16x128xf32>,
    return
  }
  func.func @transform_0(%arg0: i32) -> (i32, i32) {
    %c0_i32 = arith.constant 0 : i32
    %c0_i32_0 = arith.constant 0 : i32
    %c0_i32_1 = arith.constant 0 : i32
    return %c0_i32, %c0_i32_0 : i32, i32
  }
  func.func @transform_1(%arg0: i32) -> (i32, i32) {
    %c0_i32 = arith.constant 0 : i32
    %c0_i32_0 = arith.constant 0 : i32
    return %c0_i32, %arg0 : i32, i32
  }
  func.func @transform_2(%arg0: i32) -> (i32, i32) {
    %c0_i32 = arith.constant 0 : i32
    %c0_i32_0 = arith.constant 0 : i32
    return %c0_i32, %arg0 : i32, i32
  }
  func.func @transform_3(%arg0: i32) -> (i32, i32) {
    %c0_i32 = arith.constant 0 : i32
    %c0_i32_0 = arith.constant 0 : i32
    return %c0_i32, %arg0 : i32, i32
  }
}

module attributes {stable_mosaic.version = 11 : i64} {
  func.func @gru_bidir_kernel(%arg0: memref<8x2x32xf32, #tpu.memory_space<vmem>>, %arg1: memref<2x2x16xf32, #tpu.memory_space<vmem>>, %arg2: memref<32x96xf32, #tpu.memory_space<vmem>>, %arg3: memref<2x16x48xf32, #tpu.memory_space<vmem>>, %arg4: memref<1x96xf32, #tpu.memory_space<vmem>>, %arg5: memref<2x1x16xf32, #tpu.memory_space<vmem>>, %arg6: memref<8x2x32xf32, #tpu.memory_space<vmem>>, %arg7: memref<2x2x16xf32, #tpu.memory_space<vmem>>, %arg8: memref<8x2x96xf32, #tpu.memory_space<vmem>>) attributes {dimension_semantics = [], scalar_prefetch = 0 : i64, scratch_operands = 1 : i64, tpu.core_type = #tpu.core_type<tc>} {
    %c0 = arith.constant 0 : index
    %c0_0 = arith.constant 0 : index
    %c0_1 = arith.constant 0 : index
    %0 = vector.load %arg0[%c0, %c0_0, %c0_1] : memref<8x2x32xf32, #tpu.memory_space<vmem>>, vector<8x2x32xf32>
    %1 = vector.shape_cast %0 : vector<8x2x32xf32> to vector<16x32xf32>
    %c0_2 = arith.constant 0 : index
    %c0_3 = arith.constant 0 : index
    %2 = vector.load %arg2[%c0_2, %c0_3] : memref<32x96xf32, #tpu.memory_space<vmem>>, vector<32x96xf32>
    %cst = arith.constant dense<0.000000e+00> : vector<16x96xf32>
    %3 = tpu.matmul %1, %2, %cst {dimension_numbers = #tpu.dot_dimension_numbers<[1], [0], [0], [1], [0, 0, 1, 1], [], []>} : vector<16x32xf32>, vector<32x96xf32>, vector<16x96xf32> -> vector<16x96xf32>
    %c0_4 = arith.constant 0 : index
    %c0_5 = arith.constant 0 : index
    %4 = vector.load %arg4[%c0_4, %c0_5] : memref<1x96xf32, #tpu.memory_space<vmem>>, vector<1x96xf32>
    %5 = vector.broadcast %4 : vector<1x96xf32> to vector<16x96xf32>
    %6 = arith.addf %3, %5 : vector<16x96xf32>
    %7 = vector.shape_cast %6 : vector<16x96xf32> to vector<8x2x96xf32>
    %c0_6 = arith.constant 0 : index
    %c0_7 = arith.constant 0 : index
    %c0_8 = arith.constant 0 : index
    %8 = vector.load %arg8[%c0_6, %c0_7, %c0_8] : memref<8x2x96xf32, #tpu.memory_space<vmem>>, vector<8x2x96xf32>
    tpu.vector_store %arg8[%c0_6, %c0_7, %c0_8], %7 {strides = array<i32>} : memref<8x2x96xf32, #tpu.memory_space<vmem>>, vector<8x2x96xf32>,
    %c0_9 = arith.constant 0 : index
    %c0_10 = arith.constant 0 : index
    %c0_11 = arith.constant 0 : index
    %9 = vector.load %arg3[%c0_9, %c0_10, %c0_11] : memref<2x16x48xf32, #tpu.memory_space<vmem>>, vector<1x16x48xf32>
    %10 = vector.shape_cast %9 : vector<1x16x48xf32> to vector<16x48xf32>
    %c1 = arith.constant 1 : index
    %c0_12 = arith.constant 0 : index
    %c0_13 = arith.constant 0 : index
    %11 = vector.load %arg3[%c1, %c0_12, %c0_13] : memref<2x16x48xf32, #tpu.memory_space<vmem>>, vector<1x16x48xf32>
    %12 = vector.shape_cast %11 : vector<1x16x48xf32> to vector<16x48xf32>
    %c0_14 = arith.constant 0 : index
    %c0_15 = arith.constant 0 : index
    %c0_16 = arith.constant 0 : index
    %13 = vector.load %arg5[%c0_14, %c0_15, %c0_16] : memref<2x1x16xf32, #tpu.memory_space<vmem>>, vector<1x1x16xf32>
    %14 = vector.shape_cast %13 : vector<1x1x16xf32> to vector<1x16xf32>
    %c1_17 = arith.constant 1 : index
    %c0_18 = arith.constant 0 : index
    %c0_19 = arith.constant 0 : index
    %15 = vector.load %arg5[%c1_17, %c0_18, %c0_19] : memref<2x1x16xf32, #tpu.memory_space<vmem>>, vector<1x1x16xf32>
    %16 = vector.shape_cast %15 : vector<1x1x16xf32> to vector<1x16xf32>
    %c0_20 = arith.constant 0 : index
    %c0_21 = arith.constant 0 : index
    %c0_22 = arith.constant 0 : index
    %17 = vector.load %arg1[%c0_20, %c0_21, %c0_22] : memref<2x2x16xf32, #tpu.memory_space<vmem>>, vector<1x2x16xf32>
    %18 = vector.shape_cast %17 : vector<1x2x16xf32> to vector<2x16xf32>
    %c1_23 = arith.constant 1 : index
    %c0_24 = arith.constant 0 : index
    %c0_25 = arith.constant 0 : index
    %19 = vector.load %arg1[%c1_23, %c0_24, %c0_25] : memref<2x2x16xf32, #tpu.memory_space<vmem>>, vector<1x2x16xf32>
    %20 = vector.shape_cast %19 : vector<1x2x16xf32> to vector<2x16xf32>
    %c0_i32 = arith.constant 0 : i32
    %c8_i32 = arith.constant 8 : i32
    %21 = arith.addi %c0_i32, %c8_i32 : i32
    %c1_i32 = arith.constant 1 : i32
    %22:2 = scf.for %arg9 = %c0_i32 to %21 step %c1_i32 iter_args(%arg10 = %18, %arg11 = %20) -> (vector<2x16xf32>, vector<2x16xf32>)  : i32 {
      %c7_i32 = arith.constant 7 : i32
      %29 = arith.subi %c7_i32, %arg9 : i32
      %30 = arith.index_cast %arg9 : i32 to index
      %c0_33 = arith.constant 0 : index
      %c0_34 = arith.constant 0 : index
      %31 = vector.load %arg8[%30, %c0_33, %c0_34] : memref<8x2x96xf32, #tpu.memory_space<vmem>>, vector<1x2x96xf32>
      %32 = vector.shape_cast %31 : vector<1x2x96xf32> to vector<2x96xf32>
      %33 = arith.index_cast %29 : i32 to index
      %c0_35 = arith.constant 0 : index
      %c0_36 = arith.constant 0 : index
      %34 = vector.load %arg8[%33, %c0_35, %c0_36] : memref<8x2x96xf32, #tpu.memory_space<vmem>>, vector<1x2x96xf32>
      %35 = vector.shape_cast %34 : vector<1x2x96xf32> to vector<2x96xf32>
      %cst_37 = arith.constant dense<0.000000e+00> : vector<2x48xf32>
      %36 = tpu.matmul %arg10, %10, %cst_37 {dimension_numbers = #tpu.dot_dimension_numbers<[1], [0], [0], [1], [0, 0, 1, 1], [], []>} : vector<2x16xf32>, vector<16x48xf32>, vector<2x48xf32> -> vector<2x48xf32>
      %cst_38 = arith.constant dense<0.000000e+00> : vector<2x48xf32>
      %37 = tpu.matmul %arg11, %12, %cst_38 {dimension_numbers = #tpu.dot_dimension_numbers<[1], [0], [0], [1], [0, 0, 1, 1], [], []>} : vector<2x16xf32>, vector<16x48xf32>, vector<2x48xf32> -> vector<2x48xf32>
      %38 = vector.extract_strided_slice %32 {offsets = [0, 0], sizes = [2, 48], strides = [1, 1]} : vector<2x96xf32> to vector<2x48xf32>
      %39 = vector.extract_strided_slice %38 {offsets = [0, 0], sizes = [2, 16], strides = [1, 1]} : vector<2x48xf32> to vector<2x16xf32>
      %40 = vector.extract_strided_slice %36 {offsets = [0, 0], sizes = [2, 16], strides = [1, 1]} : vector<2x48xf32> to vector<2x16xf32>
      %41 = arith.addf %39, %40 : vector<2x16xf32>
      %42 = arith.negf %41 : vector<2x16xf32>
      %43 = math.exp %42 : vector<2x16xf32>
      %cst_39 = arith.constant 1.000000e+00 : f32
      %44 = vector.broadcast %cst_39 : f32 to vector<2x16xf32>
      %45 = arith.addf %44, %43 : vector<2x16xf32>
      %46 = arith.divf %44, %45 : vector<2x16xf32>
      %47 = vector.extract_strided_slice %38 {offsets = [0, 16], sizes = [2, 16], strides = [1, 1]} : vector<2x48xf32> to vector<2x16xf32>
      %48 = vector.extract_strided_slice %36 {offsets = [0, 16], sizes = [2, 16], strides = [1, 1]} : vector<2x48xf32> to vector<2x16xf32>
      %49 = arith.addf %47, %48 : vector<2x16xf32>
      %50 = arith.negf %49 : vector<2x16xf32>
      %51 = math.exp %50 : vector<2x16xf32>
      %cst_40 = arith.constant 1.000000e+00 : f32
      %52 = vector.broadcast %cst_40 : f32 to vector<2x16xf32>
      %53 = arith.addf %52, %51 : vector<2x16xf32>
      %54 = arith.divf %52, %53 : vector<2x16xf32>
      %55 = vector.extract_strided_slice %38 {offsets = [0, 32], sizes = [2, 16], strides = [1, 1]} : vector<2x48xf32> to vector<2x16xf32>
      %56 = vector.extract_strided_slice %36 {offsets = [0, 32], sizes = [2, 16], strides = [1, 1]} : vector<2x48xf32> to vector<2x16xf32>
      %57 = vector.broadcast %14 : vector<1x16xf32> to vector<2x16xf32>
      %58 = arith.addf %56, %57 : vector<2x16xf32>
      %59 = arith.mulf %46, %58 : vector<2x16xf32>
      %60 = arith.addf %55, %59 : vector<2x16xf32>
      %61 = math.tanh %60 : vector<2x16xf32>
      %cst_41 = arith.constant 1.000000e+00 : f32
      %62 = vector.broadcast %cst_41 : f32 to vector<2x16xf32>
      %63 = arith.subf %62, %54 : vector<2x16xf32>
      %64 = arith.mulf %63, %61 : vector<2x16xf32>
      %65 = arith.mulf %54, %arg10 : vector<2x16xf32>
      %66 = arith.addf %64, %65 : vector<2x16xf32>
      %67 = vector.extract_strided_slice %35 {offsets = [0, 48], sizes = [2, 48], strides = [1, 1]} : vector<2x96xf32> to vector<2x48xf32>
      %68 = vector.extract_strided_slice %67 {offsets = [0, 0], sizes = [2, 16], strides = [1, 1]} : vector<2x48xf32> to vector<2x16xf32>
      %69 = vector.extract_strided_slice %37 {offsets = [0, 0], sizes = [2, 16], strides = [1, 1]} : vector<2x48xf32> to vector<2x16xf32>
      %70 = arith.addf %68, %69 : vector<2x16xf32>
      %71 = arith.negf %70 : vector<2x16xf32>
      %72 = math.exp %71 : vector<2x16xf32>
      %cst_42 = arith.constant 1.000000e+00 : f32
      %73 = vector.broadcast %cst_42 : f32 to vector<2x16xf32>
      %74 = arith.addf %73, %72 : vector<2x16xf32>
      %75 = arith.divf %73, %74 : vector<2x16xf32>
      %76 = vector.extract_strided_slice %67 {offsets = [0, 16], sizes = [2, 16], strides = [1, 1]} : vector<2x48xf32> to vector<2x16xf32>
      %77 = vector.extract_strided_slice %37 {offsets = [0, 16], sizes = [2, 16], strides = [1, 1]} : vector<2x48xf32> to vector<2x16xf32>
      %78 = arith.addf %76, %77 : vector<2x16xf32>
      %79 = arith.negf %78 : vector<2x16xf32>
      %80 = math.exp %79 : vector<2x16xf32>
      %cst_43 = arith.constant 1.000000e+00 : f32
      %81 = vector.broadcast %cst_43 : f32 to vector<2x16xf32>
      %82 = arith.addf %81, %80 : vector<2x16xf32>
      %83 = arith.divf %81, %82 : vector<2x16xf32>
      %84 = vector.extract_strided_slice %67 {offsets = [0, 32], sizes = [2, 16], strides = [1, 1]} : vector<2x48xf32> to vector<2x16xf32>
      %85 = vector.extract_strided_slice %37 {offsets = [0, 32], sizes = [2, 16], strides = [1, 1]} : vector<2x48xf32> to vector<2x16xf32>
      %86 = vector.broadcast %16 : vector<1x16xf32> to vector<2x16xf32>
      %87 = arith.addf %85, %86 : vector<2x16xf32>
      %88 = arith.mulf %75, %87 : vector<2x16xf32>
      %89 = arith.addf %84, %88 : vector<2x16xf32>
      %90 = math.tanh %89 : vector<2x16xf32>
      %cst_44 = arith.constant 1.000000e+00 : f32
      %91 = vector.broadcast %cst_44 : f32 to vector<2x16xf32>
      %92 = arith.subf %91, %83 : vector<2x16xf32>
      %93 = arith.mulf %92, %90 : vector<2x16xf32>
      %94 = arith.mulf %83, %arg11 : vector<2x16xf32>
      %95 = arith.addf %93, %94 : vector<2x16xf32>
      %96 = arith.index_cast %arg9 : i32 to index
      %c0_45 = arith.constant 0 : index
      %c0_46 = arith.constant 0 : index
      %97 = vector.load %arg6[%96, %c0_45, %c0_46] : memref<8x2x32xf32, #tpu.memory_space<vmem>>, vector<1x2x16xf32>
      %98 = vector.shape_cast %97 : vector<1x2x16xf32> to vector<2x16xf32>
      %99 = vector.shape_cast %66 : vector<2x16xf32> to vector<1x2x16xf32>
      tpu.vector_store %arg6[%96, %c0_45, %c0_46], %99 {strides = array<i32>} : memref<8x2x32xf32, #tpu.memory_space<vmem>>, vector<1x2x16xf32>,
      %100 = arith.index_cast %29 : i32 to index
      %c0_47 = arith.constant 0 : index
      %c16 = arith.constant 16 : index
      %101 = vector.load %arg6[%100, %c0_47, %c16] : memref<8x2x32xf32, #tpu.memory_space<vmem>>, vector<1x2x16xf32>
      %102 = vector.shape_cast %101 : vector<1x2x16xf32> to vector<2x16xf32>
      %103 = vector.shape_cast %95 : vector<2x16xf32> to vector<1x2x16xf32>
      tpu.vector_store %arg6[%100, %c0_47, %c16], %103 {strides = array<i32>} : memref<8x2x32xf32, #tpu.memory_space<vmem>>, vector<1x2x16xf32>,
      scf.yield %66, %95 : vector<2x16xf32>, vector<2x16xf32>
    }
    %c8_i32_26 = arith.constant 8 : i32
    %c0_27 = arith.constant 0 : index
    %c0_28 = arith.constant 0 : index
    %c0_29 = arith.constant 0 : index
    %23 = vector.load %arg7[%c0_27, %c0_28, %c0_29] : memref<2x2x16xf32, #tpu.memory_space<vmem>>, vector<1x2x16xf32>
    %24 = vector.shape_cast %23 : vector<1x2x16xf32> to vector<2x16xf32>
    %25 = vector.shape_cast %22#0 : vector<2x16xf32> to vector<1x2x16xf32>
    tpu.vector_store %arg7[%c0_27, %c0_28, %c0_29], %25 {strides = array<i32>} : memref<2x2x16xf32, #tpu.memory_space<vmem>>, vector<1x2x16xf32>,
    %c1_30 = arith.constant 1 : index
    %c0_31 = arith.constant 0 : index
    %c0_32 = arith.constant 0 : index
    %26 = vector.load %arg7[%c1_30, %c0_31, %c0_32] : memref<2x2x16xf32, #tpu.memory_space<vmem>>, vector<1x2x16xf32>
    %27 = vector.shape_cast %26 : vector<1x2x16xf32> to vector<2x16xf32>
    %28 = vector.shape_cast %22#1 : vector<2x16xf32> to vector<1x2x16xf32>
    tpu.vector_store %arg7[%c1_30, %c0_31, %c0_32], %28 {strides = array<i32>} : memref<2x2x16xf32, #tpu.memory_space<vmem>>, vector<1x2x16xf32>,
    return
  }
}

</mosaic_0001>

<bundles_post_ra>
// kernel: decoder_forward.5
= control target key start
LH: loop header
LB: loop body
LE: loop exit
PB: predicated region body
PF: predicated region fallthrough
CT: control target
= control target key end

     0   :  { %s541_s12 = smov 0   ;;  %s543_s13 = smov 0   ;;  %s612_s0 = inlined_call_operand.vmem [shape: f32[16,32], index: 0, kind: input, shape index: {}]   ;;  %s613_s1 = inlined_call_operand.vmem [shape: f32[32,256], index: 1, kind: input, shape index: {}]   ;;  %s614_s2 = inlined_call_operand.vmem [shape: f32[1,256], index: 2, kind: input, shape index: {}]   ;;  %s615_s3 = inlined_call_operand.vmem [shape: f32[16,256], index: 3, kind: output, shape index: {}]  }
   0x1   :  { %s545_s14 = smov 0  }
   0x2 LB: > { %s557_s15 = sadd.s32 4294967295, %s519_s14   ;;  %s560_s16 = sadd.s32 1, %s519_s14   ;;  %s519_s14 = sphi %s545_s14, %s619_s14   ;;  %s515_s13 = sphi %s543_s13, %s618_s13   ;;  %s511_s12 = sphi %s541_s12, %s617_s12  }
   0x3   : > { %s38_s17 = ssub.s32 %s519_s14, %s560_s16  ;;  %s41_s18 = sadd.s32 1, %s515_s13 }
   0x4   : > { %p39_p0 = scmp.eq.s32.totalorder %s38_s17, 0  ;;  %p48_p1 = scmp.ne.s32.totalorder %s515_s13, %s511_s12 }
   0x5   : > { %p49_p2 = scmp.eq.s32.totalorder %s519_s14, 0  ;;  %p104_p3 = scmp.eq.s32.totalorder %s557_s15, 1 }
   0x6   : > { %s570_s19 = scalar_select %p39_p0, %s515_s13, %s41_s18  }
   0x7   : > { %p50_p4 = por %p49_p2, %p48_p1  ;;  %p572_p5 = por %p104_p3, %p48_p1 }
   0x8   : > { %p435_p6 = scmp.ge.s32.totalorder %s519_s14, 2 }
   0xa   : > { %129 = sbr.rel (%p435_p6) target bundleno = 24 (0x18), region = 20 }
  0x11   : > { %132 = sbr.rel (!%p50_p4) target bundleno = 24 (0x18), region = 24  ;;  %s134_s21 = sand.u32 (%p50_p4), 1, %s515_s13  }
  0x12   : > { %s437_s22 = sshll.u32 (%p50_p4), %s519_s14, 3  ;;  %s436_s23 = sshll.u32 (%p50_p4), %s134_s21, 5 }
  0x13   : > { %s138_s26 = scalar_lea.vmem (%p50_p4), %s613_s1, %s437_s22  ;;  %s136_s27 = scalar_lea.vmem (%p50_p4), [#allocation2], %s436_s23 }
  0x14   : > { %v172_v0 = vld [vmem:[%s138_s26] sm:$0xff] (%p50_p4)  ;;  %v174_v1 = vld [vmem:[%s138_s26 + $0x10] sm:$0xff] (%p50_p4) }
  0x15   : > { %v176_v2 = vld [vmem:[%s138_s26 + $0x20] sm:$0xff] (%p50_p4)  ;;  %173 = vst [vmem:[%s136_s27] sm:$0xff] (%p50_p4), %v172_v0  ;;  %175 = vst [vmem:[%s136_s27 + $0x8] sm:$0xff] (%p50_p4), %v174_v1  ;;  %v178_v3 = vld [vmem:[%s138_s26 + $0x30] sm:$0xff] (%p50_p4) }
  0x16   : > { %177 = vst [vmem:[%s136_s27 + $0x10] sm:$0xff] (%p50_p4), %v176_v2  ;;  %179 = vst [vmem:[%s136_s27 + $0x18] sm:$0xff] (%p50_p4), %v178_v3 }
  0x18 PF: > { %p438_p7 = scmp.ge.s32.totalorder %s519_s14, 1  ;;  %p190_p8 = scmp.lt.s32.totalorder %s519_s14, 3 }
  0x1a   : > { %p191_p9 = pnand %p438_p7, %p190_p8 }
  0x1b   : > { %s197_s28 = sand.u32 (!%p191_p9), 1, %s511_s12   ;;  %v225_v4 = vld [vmem:[%s612_s0] sm:$0xff] (!%p191_p9)  ;;  %vm238_vm0 = vcmask (!%p191_p9), 261120   ;;  %v226_v11 = vld [vmem:[%s612_s0 + $0x8] sm:$0xff] (!%p191_p9)  ;;  %p222_p10 = scmp.lt.s32.totalorder (!%p191_p9), %s557_s15, 1 }
  0x1c   : > { %194 = sbr.rel (%p191_p9) target bundleno = 265 (0x109), region = 66  ;;  %s439_s4 = sshll.u32 (!%p191_p9), %s197_s28, 5  ;;  %462 = vmatprep.mubr.msk.f32.mxu0 (!%p191_p9), %vm238_vm0, %v225_v4 }
  0x1d   : > { %s199_s5 = scalar_lea.vmem (!%p191_p9), [#allocation2], %s439_s4  ;;  %s440_s12 = sshll.u32 (!%p191_p9), %s197_s28, 4 }
  0x1e   : > { %v227_v5 = vld [vmem:[%s199_s5] sm:$0xff] (!%p191_p9)  ;;  %v228_v6 = vld [vmem:[%s199_s5 + $0x8] sm:$0xff] (!%p191_p9)  ;;  %v229_v7 = vld [vmem:[%s199_s5 + $0x10] sm:$0xff] (!%p191_p9)  ;;  %s221_s14 = scalar_lea.vmem (!%p191_p9), [#allocation3], %s440_s12 }
  0x1f   : > { %v465_v8 = vpack.c.bf16 (!%p191_p9), %v228_v6, %v227_v5  ;;  %v230_v9 = vld [vmem:[%s199_s5 + $0x18] sm:$0xff] (!%p191_p9) }
  0x20   : > { %v469_v10 = vpack.c.bf16 (!%p191_p9), %v230_v9, %v229_v7 }
  0x21   : > { %466 = vmatprep.subr.bf16.mxu0 (!%p191_p9), %v465_v8 }
  0x22   : > { %468 = vmatpush3.bf16.msra.mxu0 (!%p191_p9), %v465_v8 }
  0x23   : > { %470 = vmatprep.subr.bf16.mxu0 %v469_v10  ;;  %s223_s8 = scalar_select %p222_p10, %s557_s15, 1 }
  0x24   : > { %s445_s17 = sshll.u32 (%p572_p5), %s557_s15, 3 }
  0x25   : > { %s224_s11 = scalar_lea.vmem %s614_s2, %s223_s8  ;;  %s330_s22 = scalar_lea.vmem (%p572_p5), %s615_s3, %s445_s17 }
  0x26   : > { %472 = vmatpush3.bf16.msra.mxu0 %v469_v10  ;;  %v441_v12 = vld [vmem:[%s224_s11] ss:$0 sm:$0xff] }
  0x29   : > { %463 = vmatmul.mubr.msk.f32.vlgmr.msra.gmra.mrb[0].mxu0 %vm238_vm0, %v226_v11 }
  0xfa   : > { %328 = sbr.rel (!%p572_p5) target bundleno = 265 (0x109), region = 74 }
  0xfc   : > { %v464_v13 = vpop.f32.mrb[0].mxu0 }
  0xfd   : > { %v317_v14 = vadd.f32 %v464_v13, %v441_v12  ;;  %v311_v15 = vpop.f32.mrb[1].mxu0 }
  0xfe   : > { %v312_v16 = vadd.f32 %v441_v12, %v311_v15 }
  0xff   : > { %321 = vst [vmem:[%s221_s14 + $0x8] sm:$0xff] %v317_v14 }
 0x100   : > { %320 = vst [vmem:[%s221_s14] sm:$0xff] %v312_v16 }
 0x106   : > { %v362_v18 = vld [vmem:[%s221_s14 + $0x8] sm:$0xff] }
 0x107   : > { %v360_v17 = vld [vmem:[%s221_s14] sm:$0xff]  ;;  %363 = vst [vmem:[%s330_s22 + $0x10] sm:$0xff] %v362_v18 }
 0x108   : > { %361 = vst [vmem:[%s330_s22] sm:$0xff] %v360_v17 }
 0x109 PF: > { %p10_p11 = scmp.ge.s32.totalorder %s560_s16, 4   ;;  %s617_s12 = smov %s515_s13 }
 0x10a   : > { %s618_s13 = smov %s570_s19  ;;  %s619_s14 = smov %s560_s16 }
 0x10b   :  { %12 = sbr.rel (!%p10_p11) target bundleno = 2 (0x2), region = 146 }

// kernel: decoder_forward.3
= control target key start
LH: loop header
LB: loop body
LE: loop exit
PB: predicated region body
PF: predicated region fallthrough
CT: control target
= control target key end

     0   :  { %v57_v0 = vlaneseq  ;;  %v658_v4 = vmov 1983009808   ;;  %vm86_vm0 = vcmask 261120   ;;  %vm210_vm1 = vcmask 779264   ;;  %s848_s2 = inlined_call_operand.vmem [shape: f32[32,96], index: 2, kind: input, shape index: {}]   ;;  %s849_s6 = inlined_call_operand.vmem [shape: f32[8,2,32], index: 6, kind: output, shape index: {0}]   ;;  %s850_s7 = inlined_call_operand.vmem [shape: f32[2,2,16], index: 7, kind: output, shape index: {1}]   ;;  %s851_s0 = inlined_call_operand.vmem [shape: f32[8,2,32], index: 0, kind: input, shape index: {}]   ;;  %s852_s3 = inlined_call_operand.vmem [shape: f32[2,16,48], index: 3, kind: input, shape index: {}]   ;;  %s853_s5 = inlined_call_operand.vmem [shape: f32[2,1,16], index: 5, kind: input, shape index: {}]   ;;  %s854_s1 = inlined_call_operand.vmem [shape: f32[2,2,16], index: 1, kind: input, shape index: {}]   ;;  %s855_s4 = inlined_call_operand.vmem [shape: f32[1,96], index: 4, kind: input, shape index: {}]  }
   0x1   :  { %v33_v1 = vld [vmem:[%s848_s2] sm:$0xff]  ;;  %v34_v2 = vld [vmem:[%s848_s2 + $0x8] sm:$0xff]  ;;  %v35_v3 = vld [vmem:[%s848_s2 + $0x10] sm:$0xff]  ;;  %v55_v5 = vunpack.c.l.s4 %v658_v4 }
   0x2   :  { %v573_v6 = vpack.c.bf16 %v34_v2, %v33_v1  ;;  %v36_v7 = vld [vmem:[%s848_s2 + $0x18] sm:$0xff]  ;;  %v25_v8 = vld [vmem:[%s851_s0] sm:$0x3]  ;;  %v26_v9 = vld [vmem:[%s851_s0 + $0x2] sm:$0x3]  ;;  %v58_v10 = vshrl.u32 %v57_v0, 7 }
   0x3   :  { %v577_v11 = vpack.c.bf16 %v36_v7, %v35_v3  ;;  %v27_v12 = vld [vmem:[%s851_s0 + $0x4] sm:$0x3]  ;;  %v28_v13 = vld [vmem:[%s851_s0 + $0x6] sm:$0x3]  ;;  %v52_v14 = vcombine.low %v25_v8, %v26_v9  ;;  %v56_v15 = vunpack.c.0.s8 %v55_v5  ;;  %v29_v16 = vld [vmem:[%s851_s0 + $0x8] sm:$0x3] }
   0x4   :  { %574 = vmatprep.subr.bf16.mxu0 %v573_v6  ;;  %v53_v17 = vcombine.low %v27_v12, %v28_v13  ;;  %v30_v18 = vld [vmem:[%s851_s0 + $0xa] sm:$0x3]  ;;  %v31_v19 = vld [vmem:[%s851_s0 + $0xc] sm:$0x3]  ;;  %v32_v20 = vld [vmem:[%s851_s0 + $0xe] sm:$0x3] }
   0x5   :  { %576 = vmatpush3.bf16.msra.mxu0 %v573_v6  ;;  %v59_v21 = vsub.s32 %v56_v15, %v58_v10  ;;  %v69_v22 = vcombine.low %v29_v16, %v30_v18  ;;  %v70_v23 = vcombine.low %v31_v19, %v32_v20  ;;  %v748_v30 = vld [vmem:[%s852_s3] sm:$0xff]  ;;  %v753_v31 = vld [vmem:[%s852_s3 + $0x8] sm:$0xff]  ;;  %v758_v32 = vld [vmem:[%s852_s3 + $0x10] sm:$0xff] }
   0x6   :  { %578 = vmatprep.subr.bf16.mxu0 %v577_v11  ;;  %v763_v33 = vld [vmem:[%s852_s3 + $0x18] sm:$0xff]  ;;  %v768_v34 = vld [vmem:[%s853_s5] ss:$0 sm:$0xff]  ;;  %v773_v35 = vld [vmem:[%s853_s5 + $0x1] ss:$0 sm:$0xff] }
   0x7   :  { %v60_v24 = vrot.slane %v52_v14, %v59_v21  ;;  %v67_v25 = vrot.slane %v53_v17, %v59_v21  ;;  %v77_v26 = vrot.slane %v69_v22, %v59_v21  ;;  %v84_v27 = vrot.slane %v70_v23, %v59_v21  ;;  %v227_v36 = vld [vmem:[%s854_s1] sm:$0x3]   ;;  %v526_v37 = vld [vmem:[%s854_s1 + $0x2] sm:$0x3]   ;;  %s796_s1 = smov 0  }
   0x8   :  { %v520_v38 = vld [vmem:[%s855_s4] ss:$0 sm:$0xff] }
   0x9   :  { %580 = vmatpush3.bf16.msra.mxu0 %v577_v11  ;;  %v68_v28 = vcombine.low %v60_v24, %v67_v25  ;;  %v85_v29 = vcombine.low %v77_v26, %v84_v27 }
   0xb   :  { %556 = vmatprep.mubr.msk.f32.mxu0 %vm86_vm0, %v68_v28 }
   0xc   :  { %557 = vmatmul.mubr.msk.f32.vlgmr.msra.gmra.mrb[0].mxu0 %vm86_vm0, %v85_v29 }
  0xdf   :  { %v558_v39 = vpop.f32.mrb[0].mxu0 }
  0xe0   :  { %v163_v40 = vadd.f32 %v558_v39, %v520_v38  ;;  %v157_v41 = vpop.f32.mrb[1].mxu0 }
  0xe1   :  { %v158_v42 = vadd.f32 %v520_v38, %v157_v41 }
  0xe2   :  { %v185_v43 = vcombine.high %v163_v40, %v163_v40  ;;  %v192_v44 = vrot.slane %v163_v40, %v59_v21 }
  0xe3   :  { %v168_v45 = vcombine.high %v158_v42, %v158_v42  ;;  %v175_v46 = vrot.slane %v158_v42, %v59_v21 }
  0xe4   :  { %v199_v47 = vrot.slane %v185_v43, %v59_v21  ;;  %v200_v48 = vcombine.high %v192_v44, %v192_v44  ;;  %215 = vst.msk [vmem:[#allocation2 + $0x8] sm:$0x3] %vm210_vm1, %v192_v44 }
  0xe5   :  { %v182_v49 = vrot.slane %v168_v45, %v59_v21  ;;  %v183_v50 = vcombine.high %v175_v46, %v175_v46  ;;  %211 = vst.msk [vmem:[#allocation2] sm:$0x3] %vm210_vm1, %v175_v46 }
  0xe6   :  { %v201_v51 = vcombine.high %v199_v47, %v199_v47  ;;  %216 = vst.msk [vmem:[#allocation2 + $0xa] sm:$0x3] %vm210_vm1, %v200_v48  ;;  %217 = vst.msk [vmem:[#allocation2 + $0xc] sm:$0x3] %vm210_vm1, %v199_v47 }
  0xe7   :  { %v184_v52 = vcombine.high %v182_v49, %v182_v49  ;;  %212 = vst.msk [vmem:[#allocation2 + $0x2] sm:$0x3] %vm210_vm1, %v183_v50  ;;  %213 = vst.msk [vmem:[#allocation2 + $0x4] sm:$0x3] %vm210_vm1, %v182_v49 }
  0xe8   :  { %218 = vst.msk [vmem:[#allocation2 + $0xe] sm:$0x3] %vm210_vm1, %v201_v51 }
  0xe9   :  { %214 = vst.msk [vmem:[#allocation2 + $0x6] sm:$0x3] %vm210_vm1, %v184_v52 }
  0xea LB: > { %v585_v53 = vpack.c.bf16 %v763_v33, %v758_v32  ;;  %v582_v54 = vpack.c.bf16 %v753_v31, %v748_v30  ;;  %v659_v55 = vmov 0.0|0.0   ;;  %vm245_vm2 = vcmask 130048   ;;  %s662_s4 = smov 32   ;;  %s663_s5 = smov 48   ;;  %s656_s1 = sphi %s796_s1, %s235_s1   ;;  %v652_v36 = vphi %v227_v36, %v857_v36   ;;  %v648_v37 = vphi %v526_v37, %v856_v37  }
  0xeb   : > { %584 = vmatprep.subr.bf16.mxu1 %v659_v55  ;;  %581 = vmatprep.subr.bf16.mxu0 %v659_v55  ;;  %vm660_vm3 = vmmov 0   ;;  %v661_v56 = vmov 0.0   ;;  %s664_s2 = smov 16   ;;  %s665_s17 = smov 96   ;;  %vm477_vm4 = vcmask 123904   ;;  %vm484_vm5 = vcmask 255104  }
  0xec   : > { %586 = vmatpush3.bf16.msra.mxu1 %v585_v53  ;;  %583 = vmatpush3.bf16.msra.mxu0 %v582_v54  ;;  %s527_s18 = sshll.u32 %s656_s1, 1  ;;  %s238_s20 = ssub.s32 7, %s656_s1 }
  0xed   : > { %570 = vmatprep.mubr.msk.f32.mxu1 %vm660_vm3, %v661_v56  ;;  %563 = vmatprep.mubr.msk.f32.mxu0 %vm660_vm3, %v661_v56  ;;  %s240_s19 = scalar_lea.vmem [#allocation2], %s527_s18  ;;  %s819_s21 = sshll.u32 %s238_s20, 1 }
  0xee   : > { %404 = vrot.lane.b32.xlu0 %v768_v34, %s662_s4  ;;  %s243_s22 = scalar_lea.vmem [#allocation2], %s819_s21  ;;  %s666_s23 = smov 64  }
  0xef   : > { %571 = vmatmul.mubr.msk.f32.vlgmr.msra.gmra.mrb[0].mxu1 %vm245_vm2, %v648_v37  ;;  %564 = vmatmul.mubr.msk.f32.vlgmr.msra.gmra.mrb[0].mxu0 %vm245_vm2, %v652_v36  ;;  %s667_s24 = smov 112   ;;  %s668_s25 = smov 80  }
  0xf0   : > { %v241_v1 = vld [vmem:[%s240_s19] sm:$0x3]  ;;  %s476_s27 = scalar_lea.vmem %s849_s6, %s527_s18  ;;  %s483_s30 = scalar_lea.vmem %s849_s6, %s819_s21 }
  0xf1   : > { %v244_v6 = vld [vmem:[%s243_s22] sm:$0x3]  ;;  %s235_s1 = sadd.s32 1, %s656_s1  }
  0xf2   : > { %446 = vrot.lane.b32.xlu0 %v773_v35, %s662_s4  ;;  %p232_p0 = scmp.ge.s32.totalorder %s235_s1, 8  }
 0x160   : > { %v405_v57 = vpop.permute.xlu0 %404 }
 0x164   : > { %v447_v58 = vpop.permute.xlu0 %446 }
 0x1c2   : > { %v388_v59 = vpop.f32.mrb[0].mxu1  ;;  %v315_v60 = vpop.f32.mrb[0].mxu0 }
 0x1c3   : > { %v449_v61 = vadd.f32 %v447_v58, %v388_v59  ;;  %431 = vrot.lane.b32.xlu1 %v388_v59, %s663_s5  ;;  %v572_v62 = vpop.f32.mrb[1].mxu1  ;;  %v407_v63 = vadd.f32 %v405_v57, %v315_v60  ;;  %v565_v0 = vpop.f32.mrb[1].mxu0  ;;  %v392_v2 = vadd.f32 %v315_v60, %v241_v1 }
 0x1c5   : > { %451 = vrot.lane.b32.xlu0 %v449_v61, %s664_s2  ;;  %v531_v3 = vmul.f32 -1.442695, %v392_v2 }
 0x1c7   : > { %409 = vrot.lane.b32.xlu1 %v407_v63, %s665_s17  ;;  %622 = vpow2.f32 %v531_v3 }
 0x1d1   : > { %v623_v4 = vpop.eup %622 }
 0x1d2   : > { %v396_v5 = vadd.f32 1.0, %v623_v4 }
 0x1d4   : > { %624 = vrcp.f32 %v396_v5 }
 0x1de   : > { %v625_v10 = vpop.eup %624 }
 0x1df   : > { %v419_v25 = vsub.f32 1.0, %v625_v10 }
 0x235   : > { %v432_v7 = vpop.permute.xlu1 %431 }
 0x236   : > { %v434_v8 = vadd.f32 %v432_v7, %v244_v6 }
 0x237   : > { %v452_v16 = vpop.permute.xlu0 %451 }
 0x238   : > { %v533_v9 = vmul.f32 -1.442695, %v434_v8 }
 0x239   : > { %v410_v11 = vpop.permute.xlu1 %409 }
 0x23a   : > { %626 = vpow2.f32 %v533_v9  ;;  %v412_v12 = vmul.f32 %v625_v10, %v410_v11 }
 0x23c   : > { %414 = vrot.lane.b32.xlu1 %v412_v12, %s662_s4 }
 0x244   : > { %v627_v13 = vpop.eup %626 }
 0x245   : > { %v438_v14 = vadd.f32 1.0, %v627_v13 }
 0x247   : > { %628 = vrcp.f32 %v438_v14 }
 0x251   : > { %v629_v15 = vpop.eup %628 }
 0x252   : > { %v454_v17 = vmul.f32 %v629_v15, %v452_v16 }
 0x254   : > { %456 = vrot.lane.b32.xlu0 %v454_v17, %s662_s4 }
 0x258   : > { %425 = vrot.lane.b32.xlu0 %v652_v36, %s664_s2 }
 0x25c   : > { %467 = vrot.lane.b32.xlu0 %v648_v37, %s666_s23  ;;  %v461_v37 = vsub.f32 1.0, %v629_v15 }
 0x2ae   : > { %v415_v18 = vpop.permute.xlu1 %414 }
 0x2af   : > { %v417_v19 = vadd.f32 %v415_v18, %v241_v1 }
 0x2b1   : > { %630 = vtanh.f32 %v417_v19 }
 0x2bb   : > { %v631_v20 = vpop.eup %630 }
 0x2bc   : > { %421 = vrot.lane.b32.xlu1 %v631_v20, %s667_s24 }
 0x2c6   : > { %v457_v21 = vpop.permute.xlu0 %456 }
 0x2c7   : > { %v459_v22 = vadd.f32 %v457_v21, %v244_v6 }
 0x2c9   : > { %632 = vtanh.f32 %v459_v22 }
 0x2ca   : > { %v426_v24 = vpop.permute.xlu0 %425 }
 0x2cb   : > { %v428_v27 = vmul.f32 %v625_v10, %v426_v24 }
 0x2ce   : > { %v468_v36 = vpop.permute.xlu0 %467 }
 0x2cf   : > { %v470_v39 = vmul.f32 %v629_v15, %v468_v36 }
 0x2d3   : > { %v633_v23 = vpop.eup %632 }
 0x2d4   : > { %463 = vrot.lane.b32.xlu1 %v633_v23, %s667_s24 }
 0x32e   : > { %v422_v26 = vpop.permute.xlu1 %421 }
 0x32f   : > { %v424_v28 = vmul.f32 %v422_v26, %v419_v25 }
 0x331   : > { %v429_v29 = vadd.f32 %v428_v27, %v424_v28 }
 0x333   : > { %473 = vrot.lane.b32.xlu1 %v429_v29, %s667_s24 }
 0x346   : > { %v464_v38 = vpop.permute.xlu1 %463 }
 0x347   : > { %v466_v40 = vmul.f32 %v464_v38, %v461_v37 }
 0x349   : > { %v471_v41 = vadd.f32 %v470_v39, %v466_v40 }
 0x34b   : > { %486 = vrot.lane.b32.xlu1 %v471_v41, %s666_s23  ;;  %480 = vrot.lane.b32.xlu0 %v471_v41, %s668_s25 }
 0x3a5   : > { %v474_v42 = vpop.permute.xlu1 %473  }
 0x3a6   : > { %478 = vst.msk [vmem:[%s476_s27] sm:$0x3] %vm477_vm4, %v474_v42  ;;  %v857_v36 = vmov %v474_v42  ;;  %490 = vst.msk [vmem:[%s850_s7] sm:$0x3] (%p232_p0), %vm477_vm4, %v474_v42 }
 0x3b8   :  { %234 = sbr.rel (!%p232_p0) target bundleno = 234 (0xea), region = 67 }
 0x3bd   : > { %v487_v43 = vpop.permute.xlu1 %486   ;;  %v481_v44 = vpop.permute.xlu0 %480 }
 0x3be   : > { %485 = vst.msk [vmem:[%s483_s30] sm:$0x3] %vm484_vm5, %v481_v44  ;;  %v856_v37 = vmov %v487_v43 }
 0x3bf   :  { %535 = vst.msk [vmem:[%s850_s7 + $0x2] sm:$0x3] %vm477_vm4, %v487_v43 }

</bundles_post_ra>
